<compile_context>
chip_gen: v7x
topology: tpu7x:2x2x1
jax: 0.10.0
libtpu: 0.0.40
codegen_flags: <defaults>
</compile_context>

<pallas_src>
import functools
import math

import jax
import jax.numpy as jnp
import numpy as np
from jax.experimental import pallas as pl
from jax.experimental.pallas import tpu as pltpu


def _round_up(x, m):
    return (x + m - 1) // m * m


def _pick_tile(n_pad, preferred):
    """Largest multiple-of-128 tile <= preferred that divides n_pad (n_pad % 128 == 0)."""
    t = min(int(preferred), n_pad)
    t = max((t // 128) * 128, 128)
    while n_pad % t != 0:
        t -= 128
    return t


def _shrink_to_divisor(n_pad, t):
    """Step t down by 128 until it divides n_pad (never below 128)."""
    t -= 128
    while t > 128 and n_pad % t != 0:
        t -= 128
    return max(t, 128)


# ---------------------------------------------------------------------------
# Small row-tiled linear kernel: used to pre-project source features when
# lin_before_mp (Din > Dout), so the heavy N x N aggregation runs on the
# narrow Dout operand and the projection is not recomputed per row tile.
# bf16 x bf16 -> f32 accumulate (single-pass MXU), output stored bf16.
# ---------------------------------------------------------------------------
def _linear_kernel(x_ref, w_t_ref, o_ref):
    o_ref[...] = jnp.dot(x_ref[...], w_t_ref[...],
                         preferred_element_type=jnp.float32).astype(o_ref.dtype)


def _linear_pallas(x_bf16, w_t_bf16, out_dtype, row_tile, vmem_budget_bytes):
    n_pad, din_pad = x_bf16.shape
    dout_pad = w_t_bf16.shape[1]
    out_isz = jnp.dtype(out_dtype).itemsize

    def footprint(tm):
        return (2 * tm * din_pad * 2            # x tile, double-buffered, bf16
                + 2 * din_pad * dout_pad * 2    # weight, double-buffered, bf16
                + 2 * tm * dout_pad * out_isz)  # output tile, double-buffered

    tm = _pick_tile(n_pad, row_tile)
    while footprint(tm) > vmem_budget_bytes and tm > 128:
        tm = _shrink_to_divisor(n_pad, tm)

    vmem_limit = int(min(max(footprint(tm) + (4 << 20), 32 << 20), 48 << 20))

    return pl.pallas_call(
        _linear_kernel,
        out_shape=jax.ShapeDtypeStruct((n_pad, dout_pad), out_dtype),
        grid_spec=pltpu.PrefetchScalarGridSpec(
            num_scalar_prefetch=0,
            grid=(n_pad // tm,),
            in_specs=[
                pl.BlockSpec((tm, din_pad), lambda i: (i, 0)),
                pl.BlockSpec((din_pad, dout_pad), lambda i: (0, 0)),
            ],
            out_specs=pl.BlockSpec((tm, dout_pad), lambda i: (i, 0)),
        ),
        compiler_params=pltpu.CompilerParams(
            dimension_semantics=("parallel",),
            vmem_limit_bytes=vmem_limit),
        cost_estimate=pl.CostEstimate(
            flops=int(2 * n_pad * din_pad * dout_pad),
            transcendentals=0,
            bytes_accessed=int(n_pad * din_pad * 2 + din_pad * dout_pad * 2
                               + n_pad * dout_pad * out_isz)),
    )(x_bf16, w_t_bf16)


# ---------------------------------------------------------------------------
# Fused SAGEConv('mean') aggregation + fc_self + bias (+ optional ReLU) kernel.
# Grid = (row_tiles, k_tiles); k is the adjacency contraction axis.
# ---------------------------------------------------------------------------
def _sage_fused_kernel(*refs, apply_neigh_fc_after, apply_relu):
    if apply_neigh_fc_after:
        (adj_ref, agg_ref, feat_dst_ref, inv_deg_ref,
         w_neigh_t_ref, w_self_t_ref, bias_ref, out_ref, acc_ref) = refs
    else:
        (adj_ref, agg_ref, feat_dst_ref, inv_deg_ref,
         w_self_t_ref, bias_ref, out_ref, acc_ref) = refs
        w_neigh_t_ref = None

    k = pl.program_id(1)

    @pl.when(k == 0)
    def _():
        acc_ref[...] = jnp.zeros_like(acc_ref)

    # int8 (0/1) adjacency is upcast on the VPU (ample slack in this mem-bound regime)
    # right before the MXU dot; storing it in int8 halves the dominant HBM stream.
    # The upcast goes via f32 (guaranteed lowering path), then truncates to bf16.
    adj_bf16 = adj_ref[...].astype(jnp.float32).astype(jnp.bfloat16)
    acc_ref[...] += jnp.dot(adj_bf16, agg_ref[...],
                            preferred_element_type=jnp.float32)

    @pl.when(k == pl.num_programs(1) - 1)
    def _():
        # inv_deg precomputed host-side in f32; degree-0 rows give 0 (DGL behavior).
        neigh = acc_ref[...] * inv_deg_ref[...]
        if apply_neigh_fc_after:
            # bf16 x bf16 -> f32: single-pass MXU instead of multi-pass f32.
            h_neigh = jnp.dot(neigh.astype(jnp.bfloat16), w_neigh_t_ref[...],
                              preferred_element_type=jnp.float32)
        else:
            h_neigh = neigh  # fc_neigh was applied before message passing
        h_self = jnp.dot(feat_dst_ref[...], w_self_t_ref[...],
                         preferred_element_type=jnp.float32)
        rst = h_self + h_neigh + bias_ref[...]
        if apply_relu:
            rst = jnp.maximum(rst, 0.0)
        out_ref[...] = rst.astype(out_ref.dtype)


def _select_tiles(n_pad, din_pad, dout_pad, dh_pad, row_tile, k_tile, budget_bytes):
    """Pick (tm, tk) under a VMEM budget; returns (tm, tk, estimated_footprint)."""
    tm = _pick_tile(n_pad, row_tile)
    # Megacore balance (v7x): keep at least 2 row tiles so the "parallel" axis can
    # actually shard across both TensorCores on non-tiny graphs.
    if n_pad >= 256 and n_pad // tm < 2:
        tm = _pick_tile(n_pad, max(n_pad // 2, 128))
    tk = _pick_tile(n_pad, k_tile)

    def footprint(tm_, tk_):
        b = 0
        b += 2 * tm_ * tk_ * 1                    # adjacency tile (int8), double-buffered
        b += tm_ * tk_ * 2                        # in-kernel bf16 upcast temporary
        b += 2 * tk_ * dh_pad * 2                 # aggregation operand slab (bf16)
        b += 2 * tm_ * din_pad * 2                # dst features (bf16)
        b += 2 * tm_ * 128 * 4                    # inv_deg (lane-padded f32)
        b += 2 * din_pad * dout_pad * 2           # w_self_t (bf16)
        b += 2 * din_pad * dout_pad * 2           # w_neigh_t (bf16, worst case)
        b += 2 * 8 * dout_pad * 4                 # bias (sublane-padded f32)
        b += 2 * tm_ * dout_pad * 4               # output tile (f32)
        b += tm_ * dh_pad * 4                     # accumulator scratch (f32)
        return b

    # Shrink tk first (adjacency re-use does not depend on it), then tm.
    while footprint(tm, tk) > budget_bytes and tk > 128:
        tk = _shrink_to_divisor(n_pad, tk)
    while footprint(tm, tk) > budget_bytes and tm > 128:
        tm = _shrink_to_divisor(n_pad, tm)
    return tm, tk, footprint(tm, tk)


def sage_conv_mean(adj, feat, w_neigh, w_self, bias, *,
                   apply_relu=False, row_tile=1024, k_tile=1024,
                   vmem_budget_bytes=36 * 1024 * 1024):
    """One SAGEConv('mean', bias=True) forward on a dense homogeneous adjacency.

    adj     : (N, N)                 0/1 adjacency (dst x src); must be exactly 0/1
    feat    : (N, in_feats)          float32 node features
    w_neigh : (out_feats, in_feats)  PyTorch nn.Linear layout
    w_self  : (out_feats, in_feats)
    bias    : (out_feats,)
    returns : (N, out_feats) float32
    """
    n_dst, n_src = adj.shape
    assert n_dst == n_src, "homogeneous full-graph adjacency expected"
    n = n_dst
    in_feats = feat.shape[1]
    out_feats = w_neigh.shape[0]
    lin_before_mp = in_feats > out_feats          # DGL rule
    apply_after = not lin_before_mp

    n_pad = _round_up(n, 128)
    din_pad = _round_up(in_feats, 128)
    dout_pad = _round_up(out_feats, 128)
    dh_pad = dout_pad if lin_before_mp else din_pad

    tm, tk, fp = _select_tiles(n_pad, din_pad, dout_pad, dh_pad,
                               row_tile, k_tile, vmem_budget_bytes)
    vmem_limit = int(min(max(fp + (8 << 20), 32 << 20), 48 << 20))

    adj_f32 = jnp.asarray(adj, jnp.float32)
    # deg / inv_deg precomputed outside the kernel, in exact f32.
    deg = jnp.sum(adj_f32, axis=1, keepdims=True)
    inv_deg = 1.0 / jnp.maximum(deg, 1.0)
    inv_deg_pad = jnp.pad(inv_deg, ((0, n_pad - n), (0, 0)))

    # Adjacency stored as int8 (entries are exactly 0/1 -> lossless); upcast in-kernel.
    adj_pad = jnp.pad(adj_f32, ((0, n_pad - n), (0, n_pad - n))).astype(jnp.int8)

    # Features / weights in bf16 (f32 accumulation inside every dot).
    feat_pad = jnp.pad(jnp.asarray(feat, jnp.float32),
                       ((0, n_pad - n), (0, din_pad - in_feats))).astype(jnp.bfloat16)
    w_neigh_t = jnp.pad(jnp.asarray(w_neigh, jnp.float32).T,
                        ((0, din_pad - in_feats),
                         (0, dout_pad - out_feats))).astype(jnp.bfloat16)
    w_self_t = jnp.pad(jnp.asarray(w_self, jnp.float32).T,
                       ((0, din_pad - in_feats),
                        (0, dout_pad - out_feats))).astype(jnp.bfloat16)
    bias2d = jnp.pad(jnp.asarray(bias, jnp.float32).reshape(1, -1),
                     ((0, 0), (0, dout_pad - out_feats)))

    if lin_before_mp:
        # Project all source features once (separate small Pallas matmul), then
        # aggregate the narrow (Dout-wide) operand.
        agg = _linear_pallas(feat_pad, w_neigh_t, jnp.bfloat16,
                             max(row_tile, 512), vmem_budget_bytes)
    else:
        agg = feat_pad

    operands = [adj_pad, agg, feat_pad, inv_deg_pad]
    in_specs = [
        pl.BlockSpec((tm, tk), lambda i, k: (i, k)),        # adjacency tile (int8)
        pl.BlockSpec((tk, dh_pad), lambda i, k: (k, 0)),    # aggregation operand slab
        pl.BlockSpec((tm, din_pad), lambda i, k: (i, 0)),   # dst features (fc_self)
        pl.BlockSpec((tm, 1), lambda i, k: (i, 0)),         # inv_deg
    ]
    if apply_after:
        operands.append(w_neigh_t)
        in_specs.append(pl.BlockSpec((din_pad, dout_pad), lambda i, k: (0, 0)))
    operands += [w_self_t, bias2d]
    in_specs += [
        pl.BlockSpec((din_pad, dout_pad), lambda i, k: (0, 0)),
        pl.BlockSpec((1, dout_pad), lambda i, k: (0, 0)),
    ]

    row_tiles = n_pad // tm
    flops = 2 * n_pad * n_pad * dh_pad + 2 * n_pad * din_pad * dout_pad
    if apply_after:
        flops += 2 * n_pad * dh_pad * dout_pad
    # Accurate-ish advisory: adjacency read once at 1 B/elem, agg slab re-read once per
    # row tile, feat/weights read once, f32 output written once.
    bytes_accessed = (adj_pad.size * 1
                      + agg.size * 2 * row_tiles
                      + feat_pad.size * 2
                      + inv_deg_pad.size * 4
                      + w_self_t.size * 2
                      + bias2d.size * 4
                      + n_pad * dout_pad * 4)
    if apply_after:
        bytes_accessed += w_neigh_t.size * 2

    kernel = functools.partial(_sage_fused_kernel,
                               apply_neigh_fc_after=apply_after,
                               apply_relu=apply_relu)

    out_pad = pl.pallas_call(
        kernel,
        out_shape=jax.ShapeDtypeStruct((n_pad, dout_pad), jnp.float32),
        grid_spec=pltpu.PrefetchScalarGridSpec(
            num_scalar_prefetch=0,
            grid=(row_tiles, n_pad // tk),
            in_specs=in_specs,
            out_specs=pl.BlockSpec((tm, dout_pad), lambda i, k: (i, 0)),
            scratch_shapes=[pltpu.VMEM((tm, dh_pad), jnp.float32)],
        ),
        compiler_params=pltpu.CompilerParams(
            dimension_semantics=("parallel", "arbitrary"),
            vmem_limit_bytes=vmem_limit),
        cost_estimate=pl.CostEstimate(flops=int(flops), transcendentals=0,
                                      bytes_accessed=int(bytes_accessed)),
    )(*operands)

    return out_pad[:n, :out_feats]


def sage_forward(adj, x, layer_params, *, row_tile=1024, k_tile=1024):
    """SAGE stack: SAGEConv('mean') layers with ReLU between layers.

    Eval mode: inter-layer dropout / feat_drop are identity.
    """
    h = x
    n_layers = len(layer_params)
    for l, (w_neigh, w_self, bias) in enumerate(layer_params):
        h = sage_conv_mean(adj, h, w_neigh, w_self, bias,
                           apply_relu=(l != n_layers - 1),
                           row_tile=row_tile, k_tile=k_tile)
    return h


# ---------------------------------------------------------------------------
# Pure-JAX reference (mirrors DGL semantics and the kernel's intentional bf16
# operand casts with f32 accumulation).
# ---------------------------------------------------------------------------
def _sage_conv_ref(adj, feat, w_neigh, w_self, bias, apply_relu):
    in_feats = feat.shape[1]
    out_feats = w_neigh.shape[0]
    lin_before_mp = in_feats > out_feats
    deg = jnp.sum(adj, axis=1, keepdims=True)
    inv_deg = 1.0 / jnp.maximum(deg, 1.0)
    adj_b = adj.astype(jnp.bfloat16)
    feat_b = feat.astype(jnp.bfloat16)
    wn_b = w_neigh.T.astype(jnp.bfloat16)
    ws_b = w_self.T.astype(jnp.bfloat16)
    if lin_before_mp:
        h = jnp.dot(feat_b, wn_b,
                    preferred_element_type=jnp.float32).astype(jnp.bfloat16)
        h_neigh = jnp.dot(adj_b, h, preferred_element_type=jnp.float32) * inv_deg
    else:
        m = jnp.dot(adj_b, feat_b, preferred_element_type=jnp.float32) * inv_deg
        h_neigh = jnp.dot(m.astype(jnp.bfloat16), wn_b,
                          preferred_element_type=jnp.float32)
    rst = (jnp.dot(feat_b, ws_b, preferred_element_type=jnp.float32)
           + h_neigh + bias[None, :])
    if apply_relu:
        rst = jnp.maximum(rst, 0.0)
    return rst


def sage_forward_ref(adj, x, layer_params):
    h = x
    n_layers = len(layer_params)
    for l, (w_neigh, w_self, bias) in enumerate(layer_params):
        h = _sage_conv_ref(adj, h, w_neigh, w_self, bias, l != n_layers - 1)
    return h


def _glorot_uniform(key, shape, gain):
    # matches nn.init.xavier_uniform_ on an (out, in) weight
    fan_out, fan_in = shape
    bound = gain * math.sqrt(6.0 / (fan_in + fan_out))
    return jax.random.uniform(key, shape, jnp.float32, -bound, bound)


if __name__ == "__main__":
    N = 256            # number of nodes
    IN_FEATS = 64      # layer 0: 64 -> 128   (lin_before_mp = False branch)
    N_HIDDEN = 128
    N_CLASSES = 64     # layer 1: 128 -> 64   (lin_before_mp = True branch)

    key = jax.random.PRNGKey(0)
    k_adj, k_feat, kw0n, kw0s, kw1n, kw1s = jax.random.split(key, 6)

    # Deterministic random graph + self loops (entries exactly 0/1).
    adj = jax.random.bernoulli(k_adj, p=0.05, shape=(N, N)).astype(jnp.float32)
    adj = jnp.maximum(adj, jnp.eye(N, dtype=jnp.float32))

    feat = jax.random.normal(k_feat, (N, IN_FEATS), jnp.float32)

    gain = math.sqrt(2.0)  # nn.init.calculate_gain('relu')
    params = []
    for (din, dout), (kn, ks) in zip([(IN_FEATS, N_HIDDEN), (N_HIDDEN, N_CLASSES)],
                                     [(kw0n, kw0s), (kw1n, kw1s)]):
        w_neigh = _glorot_uniform(kn, (dout, din), gain)
        w_self = _glorot_uniform(ks, (dout, din), gain)
        bias = jnp.zeros((dout,), jnp.float32)   # th.zeros(out_feats)
        params.append((w_neigh, w_self, bias))

    # Small row/K tiles here so the 256-node demo actually exercises the
    # 2x2 tiled grid and the K-axis accumulator path; defaults are 1024.
    out = sage_forward(adj, feat, params, row_tile=128, k_tile=128)
    out = jax.block_until_ready(out)
    assert out.shape == (N, N_CLASSES)

    ref = sage_forward_ref(adj, feat, params)
    np.testing.assert_allclose(np.asarray(out), np.asarray(ref),
                               rtol=2e-2, atol=2e-2)

    print("KERNEL_OK")
</pallas_src>

<mosaic_0001>
module attributes {stable_mosaic.version = 11 : i64} {
  func.func @_sage_fused_kernel(%arg0: i32, %arg1: i32, %arg2: memref<128x128xi8, #tpu.memory_space<vmem>>, %arg3: memref<128x128xbf16, #tpu.memory_space<vmem>>, %arg4: memref<128x128xbf16, #tpu.memory_space<vmem>>, %arg5: memref<128x1xf32, #tpu.memory_space<vmem>>, %arg6: memref<128x128xbf16, #tpu.memory_space<vmem>>, %arg7: memref<128x128xbf16, #tpu.memory_space<vmem>>, %arg8: memref<1x128xf32, #tpu.memory_space<vmem>>, %arg9: memref<128x128xf32, #tpu.memory_space<vmem>>, %arg10: memref<128x128xf32, #tpu.memory_space<vmem>>) attributes {dimension_semantics = [#tpu.dimension_semantics<parallel>, #tpu.dimension_semantics<arbitrary>], iteration_bounds = array<i64: 2, 2>, scalar_prefetch = 0 : i64, scratch_operands = 1 : i64, tpu.core_type = #tpu.core_type<tc>, window_params = [{transform_indices = @transform_0, window_bounds = array<i64: 128, 128>}, {transform_indices = @transform_1, window_bounds = array<i64: 128, 128>}, {transform_indices = @transform_2, window_bounds = array<i64: 128, 128>}, {transform_indices = @transform_3, window_bounds = array<i64: 128, 1>}, {pipeline_mode = #tpu.pipeline_mode<synchronous>, transform_indices = @transform_4, window_bounds = array<i64: 128, 128>}, {pipeline_mode = #tpu.pipeline_mode<synchronous>, transform_indices = @transform_5, window_bounds = array<i64: 128, 128>}, {pipeline_mode = #tpu.pipeline_mode<synchronous>, transform_indices = @transform_6, window_bounds = array<i64: 1, 128>}, {transform_indices = @transform_7, window_bounds = array<i64: 128, 128>}]} {
    %c0_i32 = arith.constant 0 : i32
    %0 = arith.cmpi eq, %arg1, %c0_i32 : i32
    %1 = arith.extui %0 : i1 to i32
    %c0_i32_0 = arith.constant 0 : i32
    %2 = arith.cmpi ne, %1, %c0_i32_0 : i32
    scf.if %2 {
      %cst_9 = arith.constant 0.000000e+00 : f32
      %14 = vector.broadcast %cst_9 : f32 to vector<128x128xf32>
      %c0_10 = arith.constant 0 : index
      %c0_11 = arith.constant 0 : index
      %15 = vector.load %arg10[%c0_10, %c0_11] : memref<128x128xf32, #tpu.memory_space<vmem>>, vector<128x128xf32>
      tpu.vector_store %arg10[%c0_10, %c0_11], %14 {strides = array<i32>} : memref<128x128xf32, #tpu.memory_space<vmem>>, vector<128x128xf32>,
    } else {
    }
    %c0 = arith.constant 0 : index
    %c0_1 = arith.constant 0 : index
    %3 = vector.load %arg2[%c0, %c0_1] : memref<128x128xi8, #tpu.memory_space<vmem>>, vector<128x128xi8>
    %4 = arith.sitofp %3 : vector<128x128xi8> to vector<128x128xf32>
    %5 = arith.truncf %4 : vector<128x128xf32> to vector<128x128xbf16>
    %c0_2 = arith.constant 0 : index
    %c0_3 = arith.constant 0 : index
    %6 = vector.load %arg10[%c0_2, %c0_3] : memref<128x128xf32, #tpu.memory_space<vmem>>, vector<128x128xf32>
    %c0_4 = arith.constant 0 : index
    %c0_5 = arith.constant 0 : index
    %7 = vector.load %arg3[%c0_4, %c0_5] : memref<128x128xbf16, #tpu.memory_space<vmem>>, vector<128x128xbf16>
    %cst = arith.constant dense<0.000000e+00> : vector<128x128xf32>
    %8 = tpu.matmul %5, %7, %cst {dimension_numbers = #tpu.dot_dimension_numbers<[1], [0], [0], [1], [0, 0, 1, 1], [], []>} : vector<128x128xbf16>, vector<128x128xbf16>, vector<128x128xf32> -> vector<128x128xf32>
    %9 = arith.addf %6, %8 : vector<128x128xf32>
    %c0_6 = arith.constant 0 : index
    %c0_7 = arith.constant 0 : index
    %10 = vector.load %arg10[%c0_6, %c0_7] : memref<128x128xf32, #tpu.memory_space<vmem>>, vector<128x128xf32>
    tpu.vector_store %arg10[%c0_6, %c0_7], %9 {strides = array<i32>} : memref<128x128xf32, #tpu.memory_space<vmem>>, vector<128x128xf32>,
    %c1_i32 = arith.constant 1 : i32
    %11 = arith.cmpi eq, %arg1, %c1_i32 : i32
    %12 = arith.extui %11 : i1 to i32
    %c0_i32_8 = arith.constant 0 : i32
    %13 = arith.cmpi ne, %12, %c0_i32_8 : i32
    scf.if %13 {
      %c0_9 = arith.constant 0 : index
      %c0_10 = arith.constant 0 : index
      %14 = vector.load %arg10[%c0_9, %c0_10] : memref<128x128xf32, #tpu.memory_space<vmem>>, vector<128x128xf32>
      %c0_11 = arith.constant 0 : index
      %c0_12 = arith.constant 0 : index
      %15 = vector.load %arg5[%c0_11, %c0_12] : memref<128x1xf32, #tpu.memory_space<vmem>>, vector<128x1xf32>
      %16 = vector.broadcast %15 : vector<128x1xf32> to vector<128x128xf32>
      %17 = arith.mulf %14, %16 : vector<128x128xf32>
      %18 = arith.truncf %17 : vector<128x128xf32> to vector<128x128xbf16>
      %c0_13 = arith.constant 0 : index
      %c0_14 = arith.constant 0 : index
      %19 = vector.load %arg6[%c0_13, %c0_14] : memref<128x128xbf16, #tpu.memory_space<vmem>>, vector<128x128xbf16>
      %cst_15 = arith.constant dense<0.000000e+00> : vector<128x128xf32>
      %20 = tpu.matmul %18, %19, %cst_15 {dimension_numbers = #tpu.dot_dimension_numbers<[1], [0], [0], [1], [0, 0, 1, 1], [], []>} : vector<128x128xbf16>, vector<128x128xbf16>, vector<128x128xf32> -> vector<128x128xf32>
      %c0_16 = arith.constant 0 : index
      %c0_17 = arith.constant 0 : index
      %21 = vector.load %arg4[%c0_16, %c0_17] : memref<128x128xbf16, #tpu.memory_space<vmem>>, vector<128x128xbf16>
      %c0_18 = arith.constant 0 : index
      %c0_19 = arith.constant 0 : index
      %22 = vector.load %arg7[%c0_18, %c0_19] : memref<128x128xbf16, #tpu.memory_space<vmem>>, vector<128x128xbf16>
      %cst_20 = arith.constant dense<0.000000e+00> : vector<128x128xf32>
      %23 = tpu.matmul %21, %22, %cst_20 {dimension_numbers = #tpu.dot_dimension_numbers<[1], [0], [0], [1], [0, 0, 1, 1], [], []>} : vector<128x128xbf16>, vector<128x128xbf16>, vector<128x128xf32> -> vector<128x128xf32>
      %24 = arith.addf %23, %20 : vector<128x128xf32>
      %c0_21 = arith.constant 0 : index
      %c0_22 = arith.constant 0 : index
      %25 = vector.load %arg8[%c0_21, %c0_22] : memref<1x128xf32, #tpu.memory_space<vmem>>, vector<1x128xf32>
      %26 = vector.broadcast %25 : vector<1x128xf32> to vector<128x128xf32>
      %27 = arith.addf %24, %26 : vector<128x128xf32>
      %cst_23 = arith.constant 0.000000e+00 : f32
      %28 = vector.broadcast %cst_23 : f32 to vector<128x128xf32>
      %29 = arith.maximumf %27, %28 : vector<128x128xf32>
      %c0_24 = arith.constant 0 : index
      %c0_25 = arith.constant 0 : index
      %30 = vector.load %arg9[%c0_24, %c0_25] : memref<128x128xf32, #tpu.memory_space<vmem>>, vector<128x128xf32>
      tpu.vector_store %arg9[%c0_24, %c0_25], %29 {strides = array<i32>} : memref<128x128xf32, #tpu.memory_space<vmem>>, vector<128x128xf32>,
    } else {
    }
    return
  }
  func.func @transform_0(%arg0: i32, %arg1: i32) -> (i32, i32) {
    %c0_i32 = arith.constant 0 : i32
    return %arg0, %arg1 : i32, i32
  }
  func.func @transform_1(%arg0: i32, %arg1: i32) -> (i32, i32) {
    %c0_i32 = arith.constant 0 : i32
    %c0_i32_0 = arith.constant 0 : i32
    return %arg1, %c0_i32 : i32, i32
  }
  func.func @transform_2(%arg0: i32, %arg1: i32) -> (i32, i32) {
    %c0_i32 = arith.constant 0 : i32
    %c0_i32_0 = arith.constant 0 : i32
    return %arg0, %c0_i32 : i32, i32
  }
  func.func @transform_3(%arg0: i32, %arg1: i32) -> (i32, i32) {
    %c0_i32 = arith.constant 0 : i32
    %c0_i32_0 = arith.constant 0 : i32
    return %arg0, %c0_i32 : i32, i32
  }
  func.func @transform_4(%arg0: i32, %arg1: i32) -> (i32, i32) {
    %c0_i32 = arith.constant 0 : i32
    %c0_i32_0 = arith.constant 0 : i32
    %c0_i32_1 = arith.constant 0 : i32
    return %c0_i32, %c0_i32_0 : i32, i32
  }
  func.func @transform_5(%arg0: i32, %arg1: i32) -> (i32, i32) {
    %c0_i32 = arith.constant 0 : i32
    %c0_i32_0 = arith.constant 0 : i32
    %c0_i32_1 = arith.constant 0 : i32
    return %c0_i32, %c0_i32_0 : i32, i32
  }
  func.func @transform_6(%arg0: i32, %arg1: i32) -> (i32, i32) {
    %c0_i32 = arith.constant 0 : i32
    %c0_i32_0 = arith.constant 0 : i32
    %c0_i32_1 = arith.constant 0 : i32
    return %c0_i32, %c0_i32_0 : i32, i32
  }
  func.func @transform_7(%arg0: i32, %arg1: i32) -> (i32, i32) {
    %c0_i32 = arith.constant 0 : i32
    %c0_i32_0 = arith.constant 0 : i32
    return %arg0, %c0_i32 : i32, i32
  }
}

</mosaic_0001>

<bundles_post_ra>
// kernel: tpu_custom_call.1
= control target key start
LH: loop header
LB: loop body
LE: loop exit
PB: predicated region body
PF: predicated region fallthrough
CT: control target
= control target key end

     0   :  { %s2500_s0 = inlined_call_operand.vmem [shape: s8[256,256], index: 0, kind: input, shape index: {}]   ;;  %s2501_s1 = inlined_call_operand.vmem [shape: bf16[256,128], index: 1, kind: input, shape index: {}]   ;;  %s2502_s2 = inlined_call_operand.hbm [shape: bf16[256,128], index: 2, kind: input, shape index: {}]   ;;  %s2503_s3 = inlined_call_operand.vmem [shape: f32[256,1], index: 3, kind: input, shape index: {}]   ;;  %s2504_s4 = inlined_call_operand.hbm [shape: bf16[128,128], index: 4, kind: input, shape index: {}]   ;;  %s2505_s5 = inlined_call_operand.hbm [shape: bf16[128,128], index: 5, kind: input, shape index: {}]   ;;  %s2506_s6 = inlined_call_operand.vmem [shape: f32[1,128], index: 6, kind: input, shape index: {}]   ;;  %s2507_s7 = inlined_call_operand.hbm [shape: f32[256,128], index: 7, kind: output, shape index: {}]  }
   0x1   :  { %2521 = sst [smem:[#allocation22_spill]] %s2501_s1 }
   0x2   :  { %2522 = sst [smem:[#allocation23_spill]] %s2503_s3 }
   0x3   :  { %2523 = sst [smem:[#allocation24_spill]] %s2506_s6 }
   0x4   :  { %2524 = sst [smem:[#allocation25_spill]] %s2507_s7 }
   0x5   :  { %12 = vsyncpa [#allocation5], 0 }
   0x6   :  { %14 = vsyncpa [#allocation5 + $0x1], 0 }
   0x7   :  { %15 = vsyncpa [#allocation8], 0 }
   0x8   :  { %16 = vsyncpa [#allocation6], 0 }
   0x9   :  { %18 = vsyncpa [#allocation6 + $0x1], 0  ;;  %s2090_s24 = smov 0   ;;  %s2092_s25 = smov 0  }
   0xa   :  { %s2094_s26 = smov 0   ;;  %s2096_s27 = smov 0  }
   0xb   :  { %s2098_s28 = smov 0   ;;  %s2100_s29 = smov 0  }
   0xc   :  { %s2102_s30 = smov 0   ;;  %s2104_s8 = smov 0  }
   0xd   :  { %s2106_s9 = smov 0   ;;  %s2108_s10 = smov 0  }
   0xe LB: > { %2525 = sst [smem:[#allocation14_spill]] %s2000_s24  ;;  %s1440_s11 = sadd.s32 4294967295, %s2036_s10   ;;  %s2036_s10 = sphi %s2108_s10, %s24_s10   ;;  %s2032_s9 = sphi %s2106_s9, %s2569_s9   ;;  %s2028_s8 = sphi %s2104_s8, %s2568_s8   ;;  %s2024_s30 = sphi %s2102_s30, %s2567_s30   ;;  %s2020_s29 = sphi %s2100_s29, %s2566_s29   ;;  %s2016_s28 = sphi %s2098_s28, %s2565_s28   ;;  %s2012_s27 = sphi %s2096_s27, %s2564_s27   ;;  %s2008_s26 = sphi %s2094_s26, %s2563_s26   ;;  %s2004_s25 = sphi %s2092_s25, %s2562_s25   ;;  %s2000_s24 = sphi %s2090_s24, %s2561_s24  }
   0xf   : > { %2526 = sst [smem:[#allocation15_spill]] %s2024_s30  ;;  %s1441_s12 = sadd.s32 4294967294, %s2036_s10  }
  0x10   : > { %s33_s13 = sadd.s32 1, %s2028_s8  ;;  %s36_s14 = sadd.s32 1, %s2032_s9 }
  0x11   : > { %p34_p0 = scmp.ge.s32.totalorder %s33_s13, 2  ;;  %s45_s15 = sadd.s32 1, %s2016_s28 }
  0x12   : > { %p52_p1 = scmp.ne.s32.totalorder %s2016_s28, %s2012_s27  ;;  %p53_p2 = scmp.eq.s32.totalorder %s2036_s10, 0 }
  0x13   : > { %s2571_s13 = smov (%p34_p0, %s33_s13), 0  ;;  %s2573_s14 = smov (!%p34_p0, %s36_s14), %s2032_s9 }
  0x14   : > { %2527 = sst [smem:[#allocation16_spill]] %s2571_s13  ;;  %s41_s16 = ssub.s32 %s2028_s8, %s2571_s13 }
  0x15   : > { %p2153_p3 = por %p53_p2, %p52_p1  ;;  %p38_p4 = scmp.ge.s32.totalorder %s2573_s14, 2 }
  0x16   : > { %s97_s18 = sadd.s32 1, %s2008_s26  ;;  %p104_p5 = scmp.ne.s32.totalorder %s2008_s26, %s2004_s25 }
  0x17   : > { %s2528_s17 = scalar_select %p2153_p3, 1, 0 }
  0x18   : > { %p110_p6 = scmp.ne.s32.totalorder %s2004_s25, %s2000_s24  ;;  %s2575_s14 = smov (%p38_p4, %s2573_s14), 0 }
  0x19   : > { %2529 = sst [smem:[#allocation17_spill]] %s2575_s14  ;;  %p2167_p7 = por %p104_p5, %p53_p2 }
  0x1a   : > { %p2171_p8 = scmp.eq.s32.totalorder %s1440_s11, 0  ;;  %s40_s21 = ssub.s32 %s2032_s9, %s2575_s14 }
  0x1b   : > { %s2530_s19 = scalar_select %p2167_p7, 1, 0 }
  0x1c   : > { %s2531_s20 = scalar_select %p2171_p8, 1, 0 }
  0x1d   : > { %p223_p9 = scmp.eq.s32.totalorder %s1440_s11, 3  ;;  %s42_s22 = sor.u32 %s41_s16, %s40_s21 }
  0x1e   : > { %p95_p10 = scmp.eq.s32.totalorder %s40_s21, 0  ;;  %p43_p11 = scmp.eq.s32.totalorder %s42_s22, 0 }
  0x1f   : > { %p2182_p12 = por %p2171_p8, %p110_p6  ;;  %p2195_p13 = por %p223_p9, %p104_p5 }
  0x20   : > { %s2187_s13 = scalar_select %p95_p10, %s2008_s26, %s97_s18  }
  0x21   : > { %s2532_s23 = scalar_select %p2182_p12, 1, 0 }
  0x22   : > { %2533 = sst [smem:[#allocation18_spill]] %s2187_s13  ;;  %p229_p0 = scmp.eq.s32.totalorder %s1441_s12, 3 }
  0x23   : > { %s2190_s7 = scalar_select %p43_p11, %s2016_s28, %s45_s15  }
  0x24   : > { %s2535_s6 = scalar_select %p2195_p13, 1, 0 }
  0x25   : > { %2534 = sst [smem:[#allocation19_spill]] %s2190_s7  ;;  %p1442_p1 = scmp.ge.s32.totalorder %s2036_s10, 1 }
  0x26   : > { %2536 = sst [smem:[#allocation20_spill]] %s2535_s6  ;;  %p236_p2 = scmp.lt.s32.totalorder %s2036_s10, 5 }
  0x27   : > { %p2204_p4 = por %p229_p0, %p110_p6  ;;  %s2038_s15 = smov [#allocation7]  }
  0x28   : > { %p2208_p7 = pnand %p1442_p1, %p236_p2  ;;  %s248_s18 = sshll.u32 %s2038_s15, 4  ;;  %s249_s18 = int_to_ptr.vmem [resolvable:$true] %s248_s18 }
  0x29   : > { %s2537_s11 = scalar_select %p2204_p4, 1, 0 }
  0x2a   : > { %s2539_s16 = scalar_select %p2208_p7, 1, 0 }
  0x2b   : > { %2538 = sst [smem:[#allocation21_spill]] %s2537_s11  ;;  %p1694_p5 = pneg %p2208_p7 }
  0x2c   : > { %s2039_s21 = smov [#allocation9]   ;;  %s1834_s13 = scalar_lea.hbm %s2504_s4, 1024 }
  0x2d   : > { %p2216_p9 = pnand %p1694_p5, %p2171_p8  ;;  %s261_s22 = sshll.u32 %s2039_s21, 4  ;;  %s2220_s22 = int_to_ptr.vmem [resolvable:$true] %s261_s22 }
  0x2e   : > { %p1835_p6 = scmp.ne.s32.totalorder %s2504_s4, %s1834_s13  ;;  %p1841_p1 = scmp.lt.u32.totalorder %s1834_s13, %s2504_s4 }
  0x2f   : > { %p1836_p10 = pneg %p2216_p9 }
  0x31   : > { %p1837_p11 = pnand %p1836_p10, %p1835_p6 }
  0x33   : > { %p1838_p0 = pneg %p1837_p11 }
  0x35   : > { %p1843_p2 = pnand %p1841_p1, %p1838_p0 }
  0x37   : > { %1846 = shalt.err (!%p1843_p2)
}
  0x38   : > { %s1847_s21 = scalar_lea.vmem %s249_s18, 1024  ;;  %p1855_p8 = scmp.lt.s32.totalorder %s249_s18, %s249_s18 }
  0x39   : > { %p1848_p5 = scmp.ne.s32.totalorder %s249_s18, %s1847_s21  ;;  %p1856_p12 = scmp.lt.s32.totalorder %s1847_s21, %s1847_s21 }
  0x3b   : > { %p1850_p4 = pnand %p1848_p5, %p1836_p10  ;;  %p1857_p7 = por %p1856_p12, %p1855_p8 }
  0x3d   : > { %p1851_p13 = pneg %p1850_p4 }
  0x3f   : > { %p1858_p3 = pnand %p1857_p7, %p1851_p13 }
  0x41   : > { %1861 = shalt.err (!%p1858_p3)
}
  0x42   : > { %s2040_s7 = smov 64   ;;  %s2041_s14 = smov 4  }
  0x43   : > { %1697 = dma.hbm_to_vmem [thread:$0]  (!%p2216_p9), %s2504_s4, 1024, %s249_s18, [#allocation8], %s2040_s7, %s2040_s7, %s2041_s14  }
  0x44   : > { %s1862_s15 = scalar_lea.hbm %s2505_s5, 1024 }
  0x45   : > { %p1863_p4 = scmp.ne.s32.totalorder %s2505_s5, %s1862_s15  ;;  %p1869_p8 = scmp.lt.u32.totalorder %s1862_s15, %s2505_s5 }
  0x47   : > { %p1865_p3 = pnand %p1863_p4, %p1836_p10 }
  0x49   : > { %p1866_p7 = pneg %p1865_p3 }
  0x4b   : > { %p1871_p12 = pnand %p1869_p8, %p1866_p7 }
  0x4d   : > { %1874 = shalt.err (!%p1871_p12)
}
  0x4e   : > { %s1875_s18 = scalar_lea.vmem %s2220_s22, 1024  ;;  %p1883_p0 = scmp.lt.s32.totalorder %s2220_s22, %s2220_s22 }
  0x4f   : > { %p1876_p13 = scmp.ne.s32.totalorder %s2220_s22, %s1875_s18  ;;  %p1884_p1 = scmp.lt.s32.totalorder %s1875_s18, %s1875_s18 }
  0x51   : > { %p1878_p6 = pnand %p1876_p13, %p1836_p10  ;;  %p1885_p2 = por %p1884_p1, %p1883_p0 }
  0x53   : > { %p1879_p11 = pneg %p1878_p6 }
  0x55   : > { %p1886_p5 = pnand %p1885_p2, %p1879_p11 }
  0x57   : > { %1889 = shalt.err (!%p1886_p5)
}
  0x58   : > { %1700 = dma.hbm_to_vmem [thread:$0]  (!%p2216_p9), %s2505_s5, 1024, %s2220_s22, [#allocation8], %s2040_s7, %s2040_s7, %s2041_s14  }
  0x59   : > { %p1445_p4 = scmp.ge.s32.totalorder %s2036_s10, 4 }
  0x5a   : > { %p2541_p3 = scmp.ne.s32.totalorder (!%p1445_p4), %s2528_s17, 0 }
  0x5b   : > { %274 = sbr.rel (%p1445_p4) target bundleno = 133 (0x85), region = 28 }
  0x62   : > { %277 = sbr.rel (!%p2541_p3) target bundleno = 106 (0x6a), region = 32  ;;  %s279_s30 = sand.u32 (%p2541_p3), 1, %s2016_s28  }
  0x63   : > { %s1503_s6 = sshll.u32 (%p2541_p3), %s2032_s9, 3  ;;  %s1446_s24 = sshll.u32 (%p2541_p3), %s279_s30, 5 }
  0x64   : > { %s284_s13 = sadd.s32 (%p2541_p3), %s2028_s8, %s1503_s6  ;;  %s281_s22 = scalar_lea.vmem (%p2541_p3), [#allocation3], %s1446_s24 }
  0x65   : > { %s1449_s11 = sshll.u32 (%p2541_p3), %s284_s13, 3 }
  0x66   : > { %s286_s21 = scalar_lea.vmem (%p2541_p3), %s2500_s0, %s1449_s11 }
  0x67   : > { %v320_v0 = vld [vmem:[%s286_s21] sm:$0xff] (%p2541_p3)  ;;  %v322_v1 = vld [vmem:[%s286_s21 + $0x10] sm:$0xff] (%p2541_p3) }
  0x68   : > { %v324_v2 = vld [vmem:[%s286_s21 + $0x20] sm:$0xff] (%p2541_p3)  ;;  %321 = vst [vmem:[%s281_s22] sm:$0xff] (%p2541_p3), %v320_v0  ;;  %323 = vst [vmem:[%s281_s22 + $0x8] sm:$0xff] (%p2541_p3), %v322_v1  ;;  %v326_v3 = vld [vmem:[%s286_s21 + $0x30] sm:$0xff] (%p2541_p3) }
  0x69   : > { %325 = vst [vmem:[%s281_s22 + $0x10] sm:$0xff] %v324_v2  ;;  %327 = vst [vmem:[%s281_s22 + $0x18] sm:$0xff] %v326_v3 }
  0x6a PF: > { %s343_s17 = sand.u32 1, %s2008_s26   ;;  %s1504_s7 = sshll.u32 %s2032_s9, 10 }
  0x6b   : > { %s1450_s14 = sshll.u32 %s343_s17, 6  ;;  %s2283_s3 = scalar_lea.hbm %s2502_s2, %s1504_s7 }
  0x6c   : > { %s347_s30 = scalar_lea.vmem [#allocation4], %s1450_s14  ;;  %s2287_s24 = scalar_lea.sflag [#allocation5], %s343_s17 }
  0x6d   : > { %s354_s6 = sshll.u32 %s347_s30, 4  ;;  %s1890_s13 = scalar_lea.hbm %s2283_s3, 1024  ;;  %s2285_s6 = int_to_ptr.vmem [resolvable:$true] %s354_s6 }
  0x6e   : > { %p1891_p9 = scmp.ne.s32.totalorder %s2283_s3, %s1890_s13  ;;  %p2542_p10 = scmp.ne.s32.totalorder %s2530_s19, 0 }
  0x6f   : > { %s1894_s15 = scalar_lea.hbm %s2502_s2, 2048  ;;  %p1895_p12 = scmp.lt.u32.totalorder %s2283_s3, %s2502_s2 }
  0x70   : > { %p1892_p7 = pnand %p1891_p9, %p2542_p10  ;;  %p1896_p13 = scmp.lt.u32.totalorder %s1894_s15, %s1890_s13 }
  0x71   : > { %p1898_p11 = scmp.lt.u32.totalorder %s1890_s13, %s2283_s3 }
  0x72   : > { %p1893_p8 = pneg %p1892_p7  ;;  %p1897_p6 = por %p1896_p13, %p1895_p12 }
  0x74   : > { %p1899_p0 = por %p1898_p11, %p1897_p6 }
  0x76   : > { %p1900_p1 = pnand %p1899_p0, %p1893_p8 }
  0x78   : > { %1903 = shalt.err (!%p1900_p1)
}
  0x79   : > { %s1904_s17 = scalar_lea.vmem %s2285_s6, 1024  ;;  %s2042_s7 = smov [#allocation4]  }
  0x7a   : > { %p1905_p2 = scmp.ne.s32.totalorder %s2285_s6, %s1904_s17  ;;  %s1908_s14 = sshll.u32 %s2042_s7, 4  ;;  %s1909_s14 = int_to_ptr.vmem [resolvable:$false] %s1908_s14 }
  0x7b   : > { %s1910_s18 = scalar_lea.vmem %s1909_s14, 2048  ;;  %p1911_p3 = scmp.lt.s32.totalorder %s2285_s6, %s1909_s14 }
  0x7c   : > { %p1906_p5 = pnand %p1905_p2, %p2542_p10  ;;  %p1912_p9 = scmp.lt.s32.totalorder %s1910_s18, %s1904_s17 }
  0x7e   : > { %p1907_p4 = pneg %p1906_p5  ;;  %p1913_p7 = por %p1912_p9, %p1911_p3 }
  0x80   : > { %p1914_p12 = pnand %p1913_p7, %p1907_p4 }
  0x82   : > { %1917 = shalt.err (!%p1914_p12)
}
  0x83   : > { %s2043_s1 = smov 64   ;;  %s2044_s30 = smov 4  }
  0x84   : > { %1686 = dma.hbm_to_vmem [thread:$0]  (%p2542_p10), %s2283_s3, 1024, %s2285_s6, %s2287_s24, %s2043_s1, %s2043_s1, %s2044_s30  }
  0x85 PF: > { %p2543_p8 = scmp.ne.s32.totalorder %s2539_s16, 0 }
  0x86   : > { %s378_s13 = sand.u32 (!%p2543_p8), 1, %s2012_s27   ;;  %s2315_s11 = sand.u32 (!%p2543_p8), 1, %s2004_s25  }
  0x87   : > { %375 = sbr.rel (%p2543_p8) target bundleno = 799 (0x31f), region = 82  ;;  %s1454_s12 = sshll.u32 (!%p2543_p8), %s378_s13, 5 }
  0x88   : > { %s1455_s15 = sshll.u32 (!%p2543_p8), %s2315_s11, 6  ;;  %s2318_s21 = scalar_lea.vmem (!%p2543_p8), [#allocation3], %s1454_s12 }
  0x89   : > { %s385_s22 = scalar_lea.sflag (!%p2543_p8), [#allocation5], %s2315_s11  ;;  %s2321_s17 = scalar_lea.vmem (!%p2543_p8), [#allocation4], %s1455_s15 }
  0x8a   : > { %p2544_p10 = scmp.ne.s32.totalorder (!%p2543_p8), %s2532_s23, 0 }
  0x8e   : > { %1987 = dma.done.wait (%p2544_p10), %s385_s22, 1024  }
  0x8f   : > { %1989 = vsyncadd (%p2544_p10), %s385_s22, 4294966272  ;;  %p2545_p13 = scmp.ne.s32.totalorder %s2531_s20, 0 }
  0x91   : > { %1991 = dma.done.wait (%p2545_p13), [#allocation8], 2048  }
  0x92   : > { %1993 = vsyncadd (%p2545_p13), [#allocation8], 4294965248  ;;  %s2546_s27 = sld [smem:[#allocation15_spill]]  ;;  %s1458_s19 = sshll.u32 %s2315_s11, 7 }
  0x93   : > { %s1459_s16 = sshll.u32 %s2020_s29, 4  ;;  %s2547_s23 = sld [smem:[#allocation22_spill]] }
  0x94   : > { %p443_p6 = scmp.lt.s32.totalorder %s1459_s16, 31  ;;  %s2548_s30 = sld [smem:[#allocation23_spill]] }
  0x95   : > { %s2344_s12 = scalar_lea.vmem [#allocation10], %s1458_s19  ;;  %p1463_p0 = scmp.ne.s32.totalorder %s2020_s29, 0 }
  0x96   : > { %s2577_s16 = smov (!%p443_p6, %s1459_s16), 31  ;;  %v2045_v4 = vmov (!%p1463_p0), 0.0  }
  0x97   : > { %s1460_s6 = sshll.u32 %s2577_s16, 2  ;;  %460 = sbr.rel (%p1463_p0) target bundleno = 159 (0x9f), region = 102  ;;  %461 = vst [vmem:[#allocation2] sm:$0xff] (!%p1463_p0), %v2045_v4  ;;  %462 = vst [vmem:[#allocation2 + $0x8] sm:$0xff] (!%p1463_p0), %v2045_v4 }
  0x98   : > { %s1461_s3 = sshll.u32 %s2546_s27, 4  ;;  %463 = vst [vmem:[#allocation2 + $0x10] sm:$0xff] (!%p1463_p0), %v2045_v4  ;;  %464 = vst [vmem:[#allocation2 + $0x18] sm:$0xff] (!%p1463_p0), %v2045_v4 }
  0x99   : > { %p450_p11 = scmp.lt.s32.totalorder %s1461_s3, 31  ;;  %s2337_s14 = scalar_lea.vmem %s2547_s23, %s1460_s6  ;;  %465 = vst [vmem:[#allocation2 + $0x20] sm:$0xff] (!%p1463_p0), %v2045_v4  ;;  %466 = vst [vmem:[#allocation2 + $0x28] sm:$0xff] (!%p1463_p0), %v2045_v4 }
  0x9a   : > { %467 = vst [vmem:[#allocation2 + $0x30] sm:$0xff] (!%p1463_p0), %v2045_v4  ;;  %468 = vst [vmem:[#allocation2 + $0x38] sm:$0xff] (!%p1463_p0), %v2045_v4 }
  0x9b   : > { %s2579_s3 = smov (!%p450_p11, %s1461_s3), 31  ;;  %469 = vst [vmem:[#allocation2 + $0x40] sm:$0xff] (!%p1463_p0), %v2045_v4  ;;  %470 = vst [vmem:[#allocation2 + $0x48] sm:$0xff] (!%p1463_p0), %v2045_v4 }
  0x9c   : > { %s1462_s18 = sshll.u32 %s2579_s3, 3  ;;  %471 = vst [vmem:[#allocation2 + $0x50] sm:$0xff] (!%p1463_p0), %v2045_v4  ;;  %472 = vst [vmem:[#allocation2 + $0x58] sm:$0xff] (!%p1463_p0), %v2045_v4 }
  0x9d   : > { %s2342_s13 = scalar_lea.vmem %s2548_s30, %s1462_s18  ;;  %473 = vst [vmem:[#allocation2 + $0x60] sm:$0xff] (!%p1463_p0), %v2045_v4  ;;  %474 = vst [vmem:[#allocation2 + $0x68] sm:$0xff] (!%p1463_p0), %v2045_v4 }
  0x9e   : > { %475 = vst [vmem:[#allocation2 + $0x70] sm:$0xff] %v2045_v4  ;;  %476 = vst [vmem:[#allocation2 + $0x78] sm:$0xff] %v2045_v4 }
  0x9f PF: > { %v1800_v5 = vld [vmem:[%s2337_s14] sm:$0xff]   ;;  %v1801_v6 = vld [vmem:[%s2337_s14 + $0x8] sm:$0xff]   ;;  %v1802_v7 = vld [vmem:[%s2337_s14 + $0x10] sm:$0xff]   ;;  %p1472_p1 = scmp.ne.s32.totalorder %s2020_s29, 1 }
  0xa0   : > { %1554 = vmatprep.subr.bf16.mxu0 %v1800_v5  ;;  %1650 = vmatprep.subr.bf16.mxu1 %v1800_v5  ;;  %v1803_v8 = vld [vmem:[%s2337_s14 + $0x18] sm:$0xff]   ;;  %v477_v9 = vld [vmem:[%s2318_s21] sm:$0xff]  ;;  %v479_v10 = vld [vmem:[%s2318_s21 + $0x10] sm:$0xff] }
  0xa1   : > { %1555 = vmatpush3.bf16.msra.mxu0 %v1800_v5  ;;  %1658 = vmatpush3.bf16.msra.mxu1 %v1800_v5  ;;  %v481_v11 = vunpack.c.l.s8.bf16 %v477_v9  ;;  %v485_v12 = vunpack.c.l.s8.bf16 %v479_v10  ;;  %v1804_v13 = vld [vmem:[%s2337_s14 + $0x20] sm:$0xff]   ;;  %v1805_v14 = vld [vmem:[%s2337_s14 + $0x28] sm:$0xff]   ;;  %v1806_v15 = vld [vmem:[%s2337_s14 + $0x30] sm:$0xff]   ;;  %v482_v19 = vunpack.c.h.s8.bf16 %v477_v9  ;;  %v486_v20 = vunpack.c.h.s8.bf16 %v479_v10 }
  0xa2   : > { %1556 = vmatprep.subr.bf16.mxu0 %v1801_v6  ;;  %1651 = vmatprep.subr.bf16.mxu1 %v1801_v6  ;;  %v1807_v16 = vld [vmem:[%s2337_s14 + $0x38] sm:$0xff]   ;;  %v478_v17 = vld [vmem:[%s2318_s21 + $0x8] sm:$0xff]  ;;  %v491_v25 = vld [vmem:[#allocation2 + $0x10] sm:$0xff] }
  0xa3   : > { %1570 = vmatprep.mubr.bf16.mxu0 %v481_v11  ;;  %1578 = vmatprep.mubr.bf16.mxu1 %v485_v12  ;;  %v480_v18 = vld [vmem:[%s2318_s21 + $0x18] sm:$0xff]  ;;  %v483_v21 = vunpack.c.l.s8.bf16 %v478_v17  ;;  %v484_v23 = vunpack.c.h.s8.bf16 %v478_v17  ;;  %v489_v27 = vld [vmem:[#allocation2] sm:$0xff]  ;;  %v490_v37 = vld [vmem:[#allocation2 + $0x8] sm:$0xff]  ;;  %v2046_v11 = vmov (!%p1472_p1), 0   ;;  %s2549_s21 = sld [smem:[#allocation24_spill]] (!%p1472_p1) }
  0xa4   : > { %v487_v22 = vunpack.c.l.s8.bf16 %v480_v18  ;;  %v488_v24 = vunpack.c.h.s8.bf16 %v480_v18  ;;  %v499_v26 = vld [vmem:[#allocation2 + $0x50] sm:$0xff]  ;;  %v497_v28 = vld [vmem:[#allocation2 + $0x40] sm:$0xff]  ;;  %v492_v31 = vld [vmem:[#allocation2 + $0x18] sm:$0xff]  ;;  %1809 = vset.pattern.permute.xlu1 (!%p1472_p1), %v2046_v11  ;;  %1808 = vset.pattern.permute.xlu0 (!%p1472_p1), %v2046_v11 }
  0xa5   : > { %1557 = vmatpush3.bf16.msra.mxu0 %v1801_v6  ;;  %1659 = vmatpush3.bf16.msra.mxu1 %v1801_v6  ;;  %v500_v32 = vld [vmem:[#allocation2 + $0x58] sm:$0xff]  ;;  %v498_v38 = vld [vmem:[#allocation2 + $0x48] sm:$0xff]  ;;  %v495_v49 = vld [vmem:[#allocation2 + $0x30] sm:$0xff] }
  0xa6   : > { %1558 = vmatprep.subr.bf16.mxu0 %v1802_v7  ;;  %1652 = vmatprep.subr.bf16.mxu1 %v1802_v7  ;;  %v503_v50 = vld [vmem:[#allocation2 + $0x70] sm:$0xff]  ;;  %v493_v51 = vld [vmem:[#allocation2 + $0x20] sm:$0xff]  ;;  %v496_v55 = vld [vmem:[#allocation2 + $0x38] sm:$0xff] }
  0xa7   : > { %v501_v52 = vld [vmem:[#allocation2 + $0x60] sm:$0xff]  ;;  %v504_v56 = vld [vmem:[#allocation2 + $0x78] sm:$0xff]  ;;  %v494_v61 = vld [vmem:[#allocation2 + $0x28] sm:$0xff] }
  0xa8   : > { %v502_v62 = vld [vmem:[#allocation2 + $0x68] sm:$0xff]  ;;  %v720_v9 = vld [vmem:[%s2342_s13 + $0x10] sm:$0xff] (!%p1472_p1)  ;;  %v718_v10 = vld [vmem:[%s2342_s13] sm:$0xff] (!%p1472_p1) }
  0xa9   : > { %1559 = vmatpush3.bf16.msra.mxu0 %v1802_v7  ;;  %1660 = vmatpush3.bf16.msra.mxu1 %v1802_v7  ;;  %v721_v12 = vld [vmem:[%s2342_s13 + $0x18] sm:$0xff] (!%p1472_p1)  ;;  %v1811_v17 = vld [vmem:[#allocation7] sm:$0xff] (!%p1472_p1)   ;;  %v1812_v18 = vld [vmem:[#allocation9 + $0x8] sm:$0xff] (!%p1472_p1)  }
  0xaa   : > { %1560 = vmatprep.subr.bf16.mxu0 %v1803_v8  ;;  %1653 = vmatprep.subr.bf16.mxu1 %v1803_v8 }
  0xab   : > { %746 = vperm.xlu1 (!%p1472_p1), %1809, %v720_v9   ;;  %736 = vperm.xlu0 (!%p1472_p1), %1808, %v718_v10  }
  0xad   : > { %1561 = vmatpush3.bf16.msra.mxu0 %v1803_v8  ;;  %1661 = vmatpush3.bf16.msra.mxu1 %v1803_v8 }
  0xae   : > { %1562 = vmatprep.subr.bf16.mxu0 %v1804_v13  ;;  %1654 = vmatprep.subr.bf16.mxu1 %v1804_v13 }
  0xaf   : > { %751 = vperm.xlu1 (!%p1472_p1), %1809, %v721_v12  }
  0xb1   : > { %1563 = vmatpush3.bf16.msra.mxu0 %v1804_v13  ;;  %1662 = vmatpush3.bf16.msra.mxu1 %v1804_v13  ;;  %v719_v13 = vld [vmem:[%s2342_s13 + $0x8] sm:$0xff] (!%p1472_p1) }
  0xb2   : > { %1564 = vmatprep.subr.bf16.mxu0 %v1805_v14  ;;  %1655 = vmatprep.subr.bf16.mxu1 %v1805_v14 }
  0xb3   : > { %741 = vperm.xlu0 (!%p1472_p1), %1808, %v719_v13  }
  0xb5   : > { %1565 = vmatpush3.bf16.msra.mxu0 %v1805_v14  ;;  %1663 = vmatpush3.bf16.msra.mxu1 %v1805_v14  ;;  %v723_v14 = vld [vmem:[%s2342_s13 + $0x28] sm:$0xff] (!%p1472_p1) }
  0xb6   : > { %1566 = vmatprep.subr.bf16.mxu0 %v1806_v15  ;;  %1656 = vmatprep.subr.bf16.mxu1 %v1806_v15 }
  0xb7   : > { %761 = vperm.xlu1 (!%p1472_p1), %1809, %v723_v14  }
  0xb9   : > { %1567 = vmatpush3.bf16.msra.mxu0 %v1806_v15  ;;  %1664 = vmatpush3.bf16.msra.mxu1 %v1806_v15  ;;  %v722_v15 = vld [vmem:[%s2342_s13 + $0x20] sm:$0xff] (!%p1472_p1) }
  0xba   : > { %1568 = vmatprep.subr.bf16.mxu0 %v1807_v16  ;;  %1657 = vmatprep.subr.bf16.mxu1 %v1807_v16 }
  0xbb   : > { %756 = vperm.xlu0 (!%p1472_p1), %1808, %v722_v15  }
  0xbd   : > { %1569 = vmatpush3.bf16.msra.mxu0 %v1807_v16  ;;  %1665 = vmatpush3.bf16.msra.mxu1 %v1807_v16  ;;  %v1810_v16 = vld [vmem:[#allocation9] sm:$0xff] (!%p1472_p1)  }
  0xbe   : > { %1618 = vmatprep.subr.bf16.mxu0 (!%p1472_p1), %v1810_v16  ;;  %1586 = vmatprep.subr.bf16.mxu1 (!%p1472_p1), %v1811_v17 }
  0xc0   : > { %1571 = vmatmul.mubr.bf16.vlgmr.msra.gmra.mrb[0].mxu0 %v482_v19  ;;  %1579 = vmatmul.mubr.bf16.vlgmr.msra.gmra.mrb[0].mxu1 %v486_v20  ;;  %v725_v19 = vld [vmem:[%s2342_s13 + $0x38] sm:$0xff] (!%p1472_p1)  ;;  %v1813_v20 = vld [vmem:[#allocation7 + $0x8] sm:$0xff] (!%p1472_p1)  }
  0xc1   : > { %1574 = vmatprep.mubr.bf16.mxu0 %v483_v21  ;;  %1582 = vmatprep.mubr.bf16.mxu1 %v487_v22  ;;  %v724_v21 = vld [vmem:[%s2342_s13 + $0x30] sm:$0xff] (!%p1472_p1) }
  0xc2   : > { %1619 = vmatpush3.bf16.msra.mxu0 (!%p1472_p1), %v1810_v16  ;;  %1587 = vmatpush3.bf16.msra.mxu1 (!%p1472_p1), %v1811_v17  ;;  %v1814_v22 = vld [vmem:[#allocation9 + $0x10] sm:$0xff] (!%p1472_p1)  }
  0xc3   : > { %1620 = vmatprep.subr.bf16.mxu0 (!%p1472_p1), %v1812_v18  ;;  %1588 = vmatprep.subr.bf16.mxu1 (!%p1472_p1), %v1813_v20 }
  0xc4   : > { %771 = vperm.xlu1 (!%p1472_p1), %1809, %v725_v19   ;;  %766 = vperm.xlu0 (!%p1472_p1), %1808, %v724_v21  }
  0xc6   : > { %1621 = vmatpush3.bf16.msra.mxu0 (!%p1472_p1), %v1812_v18  ;;  %1589 = vmatpush3.bf16.msra.mxu1 (!%p1472_p1), %v1813_v20 }
  0xc7   : > { %1622 = vmatprep.subr.bf16.mxu0 (!%p1472_p1), %v1814_v22 }
  0xc8   : > { %1575 = vmatmul.mubr.bf16.gmra.mrb[4].mxu0 %v484_v23  ;;  %1583 = vmatmul.mubr.bf16.gmra.mrb[4].mxu1 %v488_v24  ;;  %v1815_v23 = vld [vmem:[#allocation7 + $0x10] sm:$0xff] (!%p1472_p1)   ;;  %v727_v24 = vld [vmem:[%s2342_s13 + $0x48] sm:$0xff] (!%p1472_p1) }
  0xc9   : > { %1590 = vmatprep.subr.bf16.mxu1 (!%p1472_p1), %v1815_v23  ;;  %781 = vperm.xlu1 (!%p1472_p1), %1809, %v727_v24  }
  0xca   : > { %1623 = vmatpush3.bf16.msra.mxu0 (!%p1472_p1), %v1814_v22  ;;  %1591 = vmatpush3.bf16.msra.mxu1 (!%p1472_p1), %v1815_v23 }
 0x193   : > { %v1572_v29 = vpop.f32.mrb[0].mxu0  ;;  %v1580_v30 = vpop.f32.mrb[0].mxu1 }
 0x194   : > { %v668_v33 = vadd.f32 %v1572_v29, %v491_v25  ;;  %v676_v34 = vadd.f32 %v1580_v30, %v499_v26  ;;  %v603_v35 = vpop.f32.mrb[1].mxu0  ;;  %v635_v36 = vpop.f32.mrb[1].mxu1  ;;  %v726_v25 = vld [vmem:[%s2342_s13 + $0x40] sm:$0xff] (!%p1472_p1)  ;;  %v1816_v26 = vld [vmem:[#allocation9 + $0x18] sm:$0xff] (!%p1472_p1)   ;;  %v728_v29 = vld [vmem:[%s2342_s13 + $0x50] sm:$0xff] (!%p1472_p1) }
 0x195   : > { %v666_v39 = vadd.f32 %v603_v35, %v489_v27  ;;  %v674_v40 = vadd.f32 %v635_v36, %v497_v28  ;;  %v1573_v41 = vpop.f32.mrb[2].mxu0  ;;  %v1581_v42 = vpop.f32.mrb[2].mxu1  ;;  %v1817_v27 = vld [vmem:[#allocation7 + $0x18] sm:$0xff] (!%p1472_p1)   ;;  %776 = vperm.xlu0 (!%p1472_p1), %1808, %v726_v25   ;;  %1624 = vmatprep.subr.bf16.mxu0 (!%p1472_p1), %v1816_v26  ;;  %v1818_v30 = vld [vmem:[#allocation9 + $0x20] sm:$0xff] (!%p1472_p1)   ;;  %v1821_v36 = vld [vmem:[#allocation7 + $0x28] sm:$0xff] (!%p1472_p1)  }
 0x196   : > { %684 = vst [vmem:[#allocation2 + $0x10] sm:$0xff] %v668_v33  ;;  %692 = vst [vmem:[#allocation2 + $0x50] sm:$0xff] %v676_v34  ;;  %v669_v43 = vadd.f32 %v1573_v41, %v492_v31  ;;  %v677_v44 = vadd.f32 %v1581_v42, %v500_v32  ;;  %v606_v45 = vpop.f32.mrb[3].mxu0  ;;  %v638_v46 = vpop.f32.mrb[3].mxu1  ;;  %v729_v28 = vld [vmem:[%s2342_s13 + $0x58] sm:$0xff] (!%p1472_p1)  ;;  %1592 = vmatprep.subr.bf16.mxu1 (!%p1472_p1), %v1817_v27  ;;  %v1819_v31 = vld [vmem:[#allocation7 + $0x20] sm:$0xff] (!%p1472_p1)   ;;  %1625 = vmatpush3.bf16.msra.mxu0 (!%p1472_p1), %v1816_v26 }
 0x197   : > { %682 = vst [vmem:[#allocation2] sm:$0xff] %v666_v39  ;;  %690 = vst [vmem:[#allocation2 + $0x40] sm:$0xff] %v674_v40  ;;  %v667_v47 = vadd.f32 %v606_v45, %v490_v37  ;;  %v675_v48 = vadd.f32 %v638_v46, %v498_v38  ;;  %v731_v32 = vld [vmem:[%s2342_s13 + $0x68] sm:$0xff] (!%p1472_p1)  ;;  %v730_v33 = vld [vmem:[%s2342_s13 + $0x60] sm:$0xff] (!%p1472_p1)  ;;  %791 = vperm.xlu1 (!%p1472_p1), %1809, %v729_v28   ;;  %1593 = vmatpush3.bf16.msra.mxu1 (!%p1472_p1), %v1817_v27 }
 0x198   : > { %685 = vst [vmem:[#allocation2 + $0x18] sm:$0xff] %v669_v43  ;;  %693 = vst [vmem:[#allocation2 + $0x58] sm:$0xff] %v677_v44  ;;  %v1820_v34 = vld [vmem:[#allocation9 + $0x28] sm:$0xff] (!%p1472_p1)   ;;  %1626 = vmatprep.subr.bf16.mxu0 (!%p1472_p1), %v1818_v30  ;;  %v1826_v35 = vld [vmem:[%s2321_s17] sm:$0xff] (!%p1472_p1)   ;;  %1594 = vmatprep.subr.bf16.mxu1 (!%p1472_p1), %v1819_v31 }
 0x199   : > { %683 = vst [vmem:[#allocation2 + $0x8] sm:$0xff] %v667_v47  ;;  %691 = vst [vmem:[#allocation2 + $0x48] sm:$0xff] %v675_v48  ;;  %786 = vperm.xlu0 (!%p1472_p1), %1808, %v728_v29   ;;  %v733_v37 = vld [vmem:[%s2342_s13 + $0x78] sm:$0xff] (!%p1472_p1)  ;;  %1634 = vmatprep.mubr.bf16.mxu0 (!%p1472_p1), %v1826_v35  ;;  %v732_v38 = vld [vmem:[%s2342_s13 + $0x70] sm:$0xff] (!%p1472_p1) }
 0x19a   : > { %1627 = vmatpush3.bf16.msra.mxu0 (!%p1472_p1), %v1818_v30  ;;  %v1822_v39 = vld [vmem:[#allocation9 + $0x30] sm:$0xff] (!%p1472_p1)   ;;  %v1824_v41 = vld [vmem:[#allocation9 + $0x38] sm:$0xff] (!%p1472_p1)   ;;  %v1827_v43 = vld [vmem:[%s2321_s17 + $0x8] sm:$0xff] (!%p1472_p1)  }
 0x19b   : > { %v1576_v53 = vpop.f32.mrb[4].mxu0  ;;  %v1584_v54 = vpop.f32.mrb[4].mxu1  ;;  %701 = sbr.rel (%p1472_p1) target bundleno = 771 (0x303), region = 106  ;;  %801 = vperm.xlu1 (!%p1472_p1), %1809, %v731_v32   ;;  %1595 = vmatpush3.bf16.msra.mxu1 (!%p1472_p1), %v1819_v31  ;;  %v1823_v40 = vld [vmem:[#allocation7 + $0x30] sm:$0xff] (!%p1472_p1)   ;;  %v1825_v42 = vld [vmem:[#allocation7 + $0x38] sm:$0xff] (!%p1472_p1)   ;;  %v1830_v46 = vld [vmem:[%s2321_s17 + $0x20] sm:$0xff] (!%p1472_p1)  }
 0x19c   : > { %v672_v57 = vadd.f32 %v1576_v53, %v495_v49  ;;  %v680_v58 = vadd.f32 %v1584_v54, %v503_v50  ;;  %v619_v59 = vpop.f32.mrb[5].mxu0  ;;  %v651_v60 = vpop.f32.mrb[5].mxu1  ;;  %1628 = vmatprep.subr.bf16.mxu0 (!%p1472_p1), %v1820_v34  ;;  %1596 = vmatprep.subr.bf16.mxu1 (!%p1472_p1), %v1821_v36  ;;  %v1828_v44 = vld [vmem:[%s2321_s17 + $0x10] sm:$0xff] (!%p1472_p1)   ;;  %v1829_v45 = vld [vmem:[%s2321_s17 + $0x18] sm:$0xff] (!%p1472_p1)   ;;  %v1831_v47 = vld [vmem:[%s2321_s17 + $0x28] sm:$0xff] (!%p1472_p1)  }
 0x19d   : > { %v670_v63 = vadd.f32 %v619_v59, %v493_v51  ;;  %v678_v0 = vadd.f32 %v651_v60, %v501_v52  ;;  %v1577_v1 = vpop.f32.mrb[6].mxu0  ;;  %v1585_v2 = vpop.f32.mrb[6].mxu1  ;;  %796 = vperm.xlu0 (!%p1472_p1), %1808, %v730_v33   ;;  %v1832_v48 = vld [vmem:[%s2321_s17 + $0x30] sm:$0xff] (!%p1472_p1)   ;;  %v1833_v49 = vld [vmem:[%s2321_s17 + $0x38] sm:$0xff] (!%p1472_p1)  }
 0x19e   : > { %688 = vst [vmem:[#allocation2 + $0x30] sm:$0xff] %v672_v57  ;;  %696 = vst [vmem:[#allocation2 + $0x70] sm:$0xff] %v680_v58  ;;  %v673_v3 = vadd.f32 %v1577_v1, %v496_v55  ;;  %v681_v4 = vadd.f32 %v1585_v2, %v504_v56  ;;  %v622_v5 = vpop.f32.mrb[7].mxu0  ;;  %v654_v6 = vpop.f32.mrb[7].mxu1  ;;  %1629 = vmatpush3.bf16.msra.mxu0 (!%p1472_p1), %v1820_v34  ;;  %v704_v52 = vld [vmem:[#allocation2 + $0x10] sm:$0xff] (!%p1472_p1)  ;;  %v702_v53 = vld [vmem:[#allocation2] sm:$0xff] (!%p1472_p1) }
 0x19f   : > { %686 = vst [vmem:[#allocation2 + $0x20] sm:$0xff] %v670_v63  ;;  %694 = vst [vmem:[#allocation2 + $0x60] sm:$0xff] %v678_v0  ;;  %v671_v7 = vadd.f32 %v622_v5, %v494_v61  ;;  %v679_v8 = vadd.f32 %v654_v6, %v502_v62  ;;  %811 = vperm.xlu1 (!%p1472_p1), %1809, %v733_v37   ;;  %1597 = vmatpush3.bf16.msra.mxu1 (!%p1472_p1), %v1821_v36  ;;  %v747_v50 = vpop.permute.xlu1 (!%p1472_p1), %746  ;;  %v737_v51 = vpop.permute.xlu0 (!%p1472_p1), %736  ;;  %v705_v54 = vld [vmem:[#allocation2 + $0x18] sm:$0xff] (!%p1472_p1)  ;;  %v710_v14 = vld [vmem:[#allocation2 + $0x40] sm:$0xff] (!%p1472_p1) }
 0x1a0   : > { %689 = vst [vmem:[#allocation2 + $0x38] sm:$0xff] %v673_v3  ;;  %697 = vst [vmem:[#allocation2 + $0x78] sm:$0xff] %v681_v4  ;;  %1630 = vmatprep.subr.bf16.mxu0 (!%p1472_p1), %v1822_v39  ;;  %1598 = vmatprep.subr.bf16.mxu1 (!%p1472_p1), %v1823_v40  ;;  %v703_v55 = vld [vmem:[#allocation2 + $0x8] sm:$0xff] (!%p1472_p1)  ;;  %v816_v58 = vmul.f32 (!%p1472_p1), %v747_v50, %v704_v52  ;;  %v814_v59 = vmul.f32 (!%p1472_p1), %v737_v51, %v702_v53  ;;  %v713_v20 = vld [vmem:[#allocation2 + $0x58] sm:$0xff] (!%p1472_p1) }
 0x1a1   : > { %687 = vst [vmem:[#allocation2 + $0x28] sm:$0xff] %v671_v7  ;;  %695 = vst [vmem:[#allocation2 + $0x68] sm:$0xff] %v679_v8  ;;  %806 = vperm.xlu0 (!%p1472_p1), %1808, %v732_v38   ;;  %v711_v13 = vld [vmem:[#allocation2 + $0x48] sm:$0xff] (!%p1472_p1)  ;;  %v712_v21 = vld [vmem:[#allocation2 + $0x50] sm:$0xff] (!%p1472_p1) }
 0x1a2   : > { %1631 = vmatpush3.bf16.msra.mxu0 %v1822_v39 }
 0x1a3   : > { %1632 = vmatprep.subr.bf16.mxu0 %v1824_v41  ;;  %1599 = vmatpush3.bf16.msra.mxu1 %v1823_v40  ;;  %v752_v56 = vpop.permute.xlu1 %751  ;;  %v742_v57 = vpop.permute.xlu0 %741 }
 0x1a4   : > { %1600 = vmatprep.subr.bf16.mxu1 %v1825_v42  ;;  %v817_v60 = vmul.f32 %v752_v56, %v705_v54  ;;  %v815_v61 = vmul.f32 %v742_v57, %v703_v55 }
 0x1a5   : > { %v708_v7 = vld [vmem:[#allocation2 + $0x30] sm:$0xff] }
 0x1a6   : > { %1633 = vmatpush3.bf16.msra.mxu0 %v1824_v41  ;;  %v706_v63 = vld [vmem:[#allocation2 + $0x20] sm:$0xff]  ;;  %v831_v0 = vpack.c.bf16 %v817_v60, %v816_v58  ;;  %v830_v1 = vpack.c.bf16 %v815_v61, %v814_v59  ;;  %v716_v35 = vld [vmem:[#allocation2 + $0x70] sm:$0xff] }
 0x1a7   : > { %1601 = vmatpush3.bf16.msra.mxu1 %v1825_v42  ;;  %v762_v2 = vpop.permute.xlu1 %761  ;;  %v757_v3 = vpop.permute.xlu0 %756  ;;  %v709_v6 = vld [vmem:[#allocation2 + $0x38] sm:$0xff]  ;;  %v714_v28 = vld [vmem:[#allocation2 + $0x60] sm:$0xff] }
 0x1a8   : > { %v707_v62 = vld [vmem:[#allocation2 + $0x28] sm:$0xff]  ;;  %v818_v5 = vmul.f32 %v757_v3, %v706_v63  ;;  %1602 = vmatprep.mubr.bf16.mxu1 %v830_v1  ;;  %v717_v34 = vld [vmem:[#allocation2 + $0x78] sm:$0xff]  ;;  %v2395_v59 = vld [vmem:[%s2549_s21] ss:$0 sm:$0xff] }
 0x1a9   : > { %1635 = vmatmul.mubr.bf16.vlgmr.msra.gmra.mrb[0].mxu0 %v1827_v43  ;;  %v819_v4 = vmul.f32 %v762_v2, %v707_v62  ;;  %v715_v27 = vld [vmem:[#allocation2 + $0x68] sm:$0xff] }
 0x1aa   : > { %1638 = vmatprep.mubr.bf16.mxu0 %v1828_v44  ;;  %1603 = vmatmul.mubr.bf16.vlgmr.msra.gmra.mrb[0].mxu1 %v831_v0 }
 0x1ab   : > { %v832_v8 = vpack.c.bf16 %v819_v4, %v818_v5  ;;  %v772_v9 = vpop.permute.xlu1 %771  ;;  %v767_v10 = vpop.permute.xlu0 %766 }
 0x1ac   : > { %v821_v11 = vmul.f32 %v772_v9, %v709_v6  ;;  %v820_v12 = vmul.f32 %v767_v10, %v708_v7 }
 0x1ad   : > { %1606 = vmatprep.mubr.bf16.mxu1 %v832_v8 }
 0x1ae   : > { %v833_v15 = vpack.c.bf16 %v821_v11, %v820_v12 }
 0x1af   : > { %v782_v16 = vpop.permute.xlu1 %781 }
 0x1b0   : > { %v823_v18 = vmul.f32 %v782_v16, %v711_v13 }
 0x1b1   : > { %1639 = vmatmul.mubr.bf16.gmra.mrb[4].mxu0 %v1829_v45 }
 0x1b2   : > { %1642 = vmatprep.mubr.bf16.mxu0 %v1830_v46  ;;  %1607 = vmatmul.mubr.bf16.gmra.mrb[4].mxu1 %v833_v15 }
 0x1b9   : > { %1643 = vmatmul.mubr.bf16.gmra.mrb[8].mxu0 %v1831_v47 }
 0x1ba   : > { %1646 = vmatprep.mubr.bf16.mxu0 %v1832_v48 }
 0x1c1   : > { %1647 = vmatmul.mubr.bf16.gmra.mrb[12].mxu0 %v1833_v49 }
 0x214   : > { %v777_v17 = vpop.permute.xlu0 %776 }
 0x215   : > { %v822_v19 = vmul.f32 %v777_v17, %v710_v14 }
 0x216   : > { %v792_v23 = vpop.permute.xlu1 %791 }
 0x217   : > { %v834_v22 = vpack.c.bf16 %v823_v18, %v822_v19  ;;  %v825_v25 = vmul.f32 %v792_v23, %v713_v20 }
 0x218   : > { %v787_v24 = vpop.permute.xlu0 %786 }
 0x219   : > { %v824_v26 = vmul.f32 %v787_v24, %v712_v21  ;;  %1610 = vmatprep.mubr.bf16.mxu1 %v834_v22 }
 0x21a   : > { %v802_v30 = vpop.permute.xlu1 %801 }
 0x21b   : > { %v835_v29 = vpack.c.bf16 %v825_v25, %v824_v26  ;;  %v827_v32 = vmul.f32 %v802_v30, %v715_v27 }
 0x21c   : > { %v797_v31 = vpop.permute.xlu0 %796 }
 0x21d   : > { %v826_v33 = vmul.f32 %v797_v31, %v714_v28  ;;  %1611 = vmatmul.mubr.bf16.gmra.mrb[8].mxu1 %v835_v29 }
 0x21e   : > { %v812_v37 = vpop.permute.xlu1 %811 }
 0x21f   : > { %v836_v36 = vpack.c.bf16 %v827_v32, %v826_v33  ;;  %v829_v39 = vmul.f32 %v812_v37, %v717_v34 }
 0x220   : > { %v807_v38 = vpop.permute.xlu0 %806 }
 0x221   : > { %v828_v40 = vmul.f32 %v807_v38, %v716_v35  ;;  %1614 = vmatprep.mubr.bf16.mxu1 %v836_v36 }
 0x223   : > { %v837_v41 = vpack.c.bf16 %v829_v39, %v828_v40 }
 0x225   : > { %1615 = vmatmul.mubr.bf16.gmra.mrb[12].mxu1 %v837_v41 }
 0x27c   : > { %v1636_v42 = vpop.f32.mrb[0].mxu0 }
 0x27d   : > { %v1161_v43 = vpop.f32.mrb[1].mxu0  ;;  %v1604_v58 = vpop.f32.mrb[0].mxu1 }
 0x27e   : > { %v1637_v44 = vpop.f32.mrb[2].mxu0  ;;  %v1170_v60 = vadd.f32 %v1636_v42, %v1604_v58  ;;  %v936_v61 = vpop.f32.mrb[1].mxu1 }
 0x27f   : > { %v1164_v45 = vpop.f32.mrb[3].mxu0  ;;  %v1162_v62 = vadd.f32 %v1161_v43, %v936_v61  ;;  %v1605_v63 = vpop.f32.mrb[2].mxu1 }
 0x280   : > { %v1233_v0 = vadd.f32 %v2395_v59, %v1170_v60  ;;  %v1173_v1 = vadd.f32 %v1637_v44, %v1605_v63  ;;  %v939_v2 = vpop.f32.mrb[3].mxu1 }
 0x281   : > { %v1231_v3 = vadd.f32 %v2395_v59, %v1162_v62  ;;  %v1165_v4 = vadd.f32 %v1164_v45, %v939_v2 }
 0x282   : > { %v1249_v5 = vmax.f32 %v1233_v0, 0.0  ;;  %v1234_v6 = vadd.f32 %v2395_v59, %v1173_v1 }
 0x283   : > { %v1247_v7 = vmax.f32 %v1231_v3, 0.0  ;;  %v1232_v8 = vadd.f32 %v2395_v59, %v1165_v4 }
 0x284   : > { %v1640_v46 = vpop.f32.mrb[4].mxu0  ;;  %1265 = vst [vmem:[%s2344_s12 + $0x10] sm:$0xff] %v1249_v5  ;;  %v1250_v9 = vmax.f32 %v1234_v6, 0.0 }
 0x285   : > { %v1177_v47 = vpop.f32.mrb[5].mxu0  ;;  %1263 = vst [vmem:[%s2344_s12] sm:$0xff] %v1247_v7  ;;  %v1248_v10 = vmax.f32 %v1232_v8, 0.0  ;;  %v1608_v11 = vpop.f32.mrb[4].mxu1 }
 0x286   : > { %v1641_v48 = vpop.f32.mrb[6].mxu0  ;;  %1266 = vst [vmem:[%s2344_s12 + $0x18] sm:$0xff] %v1250_v9  ;;  %v1186_v12 = vadd.f32 %v1640_v46, %v1608_v11  ;;  %v952_v13 = vpop.f32.mrb[5].mxu1 }
 0x287   : > { %v1180_v49 = vpop.f32.mrb[7].mxu0  ;;  %1264 = vst [vmem:[%s2344_s12 + $0x8] sm:$0xff] %v1248_v10  ;;  %v1178_v14 = vadd.f32 %v1177_v47, %v952_v13  ;;  %v1609_v15 = vpop.f32.mrb[6].mxu1 }
 0x288   : > { %v1237_v16 = vadd.f32 %v2395_v59, %v1186_v12  ;;  %v1189_v17 = vadd.f32 %v1641_v48, %v1609_v15  ;;  %v955_v18 = vpop.f32.mrb[7].mxu1 }
 0x289   : > { %v1235_v19 = vadd.f32 %v2395_v59, %v1178_v14  ;;  %v1181_v20 = vadd.f32 %v1180_v49, %v955_v18 }
 0x28a   : > { %v1253_v21 = vmax.f32 %v1237_v16, 0.0  ;;  %v1238_v22 = vadd.f32 %v2395_v59, %v1189_v17 }
 0x28b   : > { %v1251_v23 = vmax.f32 %v1235_v19, 0.0  ;;  %v1236_v24 = vadd.f32 %v2395_v59, %v1181_v20 }
 0x28c   : > { %v1644_v50 = vpop.f32.mrb[8].mxu0  ;;  %1269 = vst [vmem:[%s2344_s12 + $0x30] sm:$0xff] %v1253_v21  ;;  %v1254_v25 = vmax.f32 %v1238_v22, 0.0 }
 0x28d   : > { %v1193_v51 = vpop.f32.mrb[9].mxu0  ;;  %1267 = vst [vmem:[%s2344_s12 + $0x20] sm:$0xff] %v1251_v23  ;;  %v1252_v26 = vmax.f32 %v1236_v24, 0.0 }
 0x28e   : > { %v1645_v52 = vpop.f32.mrb[10].mxu0  ;;  %1270 = vst [vmem:[%s2344_s12 + $0x38] sm:$0xff] %v1254_v25 }
 0x28f   : > { %v1196_v53 = vpop.f32.mrb[11].mxu0  ;;  %1268 = vst [vmem:[%s2344_s12 + $0x28] sm:$0xff] %v1252_v26 }
 0x294   : > { %v2384_v54 = vpop.f32.mrb[12].mxu0 }
 0x295   : > { %v2386_v55 = vpop.f32.mrb[13].mxu0 }
 0x296   : > { %v2388_v56 = vpop.f32.mrb[14].mxu0 }
 0x297   : > { %v2390_v57 = vpop.f32.mrb[15].mxu0 }
 0x2f0   : > { %v1612_v27 = vpop.f32.mrb[8].mxu1 }
 0x2f1   : > { %v1202_v28 = vadd.f32 %v1644_v50, %v1612_v27  ;;  %v968_v29 = vpop.f32.mrb[9].mxu1 }
 0x2f2   : > { %v1194_v30 = vadd.f32 %v1193_v51, %v968_v29  ;;  %v1613_v31 = vpop.f32.mrb[10].mxu1 }
 0x2f3   : > { %v1241_v32 = vadd.f32 %v2395_v59, %v1202_v28  ;;  %v1205_v33 = vadd.f32 %v1645_v52, %v1613_v31  ;;  %v971_v34 = vpop.f32.mrb[11].mxu1 }
 0x2f4   : > { %v1239_v35 = vadd.f32 %v2395_v59, %v1194_v30  ;;  %v1197_v36 = vadd.f32 %v1196_v53, %v971_v34 }
 0x2f5   : > { %v1257_v37 = vmax.f32 %v1241_v32, 0.0  ;;  %v1242_v38 = vadd.f32 %v2395_v59, %v1205_v33 }
 0x2f6   : > { %v1255_v39 = vmax.f32 %v1239_v35, 0.0  ;;  %v1240_v40 = vadd.f32 %v2395_v59, %v1197_v36 }
 0x2f7   : > { %1273 = vst [vmem:[%s2344_s12 + $0x50] sm:$0xff] %v1257_v37  ;;  %v1258_v41 = vmax.f32 %v1242_v38, 0.0 }
 0x2f8   : > { %1271 = vst [vmem:[%s2344_s12 + $0x40] sm:$0xff] %v1255_v39  ;;  %v1256_v42 = vmax.f32 %v1240_v40, 0.0  ;;  %v1616_v43 = vpop.f32.mrb[12].mxu1 }
 0x2f9   : > { %1274 = vst [vmem:[%s2344_s12 + $0x58] sm:$0xff] %v1258_v41  ;;  %v1218_v44 = vadd.f32 %v2384_v54, %v1616_v43  ;;  %v984_v45 = vpop.f32.mrb[13].mxu1 }
 0x2fa   : > { %1272 = vst [vmem:[%s2344_s12 + $0x48] sm:$0xff] %v1256_v42  ;;  %v1210_v46 = vadd.f32 %v2386_v55, %v984_v45  ;;  %v1617_v47 = vpop.f32.mrb[14].mxu1 }
 0x2fb   : > { %v1245_v48 = vadd.f32 %v2395_v59, %v1218_v44  ;;  %v1221_v49 = vadd.f32 %v2388_v56, %v1617_v47  ;;  %v987_v50 = vpop.f32.mrb[15].mxu1 }
 0x2fc   : > { %v1243_v51 = vadd.f32 %v2395_v59, %v1210_v46  ;;  %v1213_v52 = vadd.f32 %v2390_v57, %v987_v50 }
 0x2fd   : > { %v1261_v53 = vmax.f32 %v1245_v48, 0.0  ;;  %v1246_v54 = vadd.f32 %v2395_v59, %v1221_v49 }
 0x2fe   : > { %v1259_v58 = vmax.f32 %v1243_v51, 0.0  ;;  %v1244_v60 = vadd.f32 %v2395_v59, %v1213_v52 }
 0x2ff   : > { %1277 = vst [vmem:[%s2344_s12 + $0x70] sm:$0xff] %v1261_v53  ;;  %v1262_v61 = vmax.f32 %v1246_v54, 0.0 }
 0x300   : > { %1275 = vst [vmem:[%s2344_s12 + $0x60] sm:$0xff] %v1259_v58  ;;  %v1260_v55 = vmax.f32 %v1244_v60, 0.0 }
 0x301   : > { %1278 = vst [vmem:[%s2344_s12 + $0x78] sm:$0xff] %v1262_v61 }
 0x302   : > { %1276 = vst [vmem:[%s2344_s12 + $0x68] sm:$0xff] %v1260_v55 }
 0x303 PF: > { %s2550_s22 = sld [smem:[#allocation15_spill]]  ;;  %s2551_s17 = sld [smem:[#allocation20_spill]] }
 0x304   : > { %s2552_s3 = sld [smem:[#allocation25_spill]]  ;;  %s1293_s24 = sshll.u32 %s2344_s12, 4  ;;  %s2440_s24 = int_to_ptr.vmem [resolvable:$true] %s1293_s24 }
 0x305   : > { %s1280_s7 = scalar_lea.sflag [#allocation6], %s2315_s11  ;;  %s1918_s23 = scalar_lea.vmem %s2440_s24, 2048 }
 0x306   : > { %p1919_p2 = scmp.ne.s32.totalorder %s2440_s24, %s1918_s23  ;;  %s2047_s14 = smov [#allocation10]  }
 0x307   : > { %s1922_s18 = sshll.u32 %s2047_s14, 4  ;;  %s1923_s18 = int_to_ptr.vmem [resolvable:$false] %s1922_s18 }
 0x308   : > { %s1924_s1 = scalar_lea.vmem %s1923_s18, 4096  ;;  %p1925_p9 = scmp.lt.s32.totalorder %s2440_s24, %s1923_s18 }
 0x309   : > { %s1505_s27 = sshll.u32 %s2550_s22, 11  ;;  %p2553_p5 = scmp.ne.s32.totalorder %s2551_s17, 0 }
 0x30a   : > { %s2437_s6 = scalar_lea.hbm %s2552_s3, %s1505_s27  ;;  %p1926_p7 = scmp.lt.s32.totalorder %s1924_s1, %s1918_s23 }
 0x30b   : > { %p1920_p4 = pnand %p1919_p2, %p2553_p5 }
 0x30c   : > { %p1927_p12 = por %p1926_p7, %p1925_p9 }
 0x30d   : > { %p1921_p3 = pneg %p1920_p4 }
 0x30f   : > { %p1928_p8 = pnand %p1927_p12, %p1921_p3 }
 0x311   : > { %1931 = shalt.err (!%p1928_p8)
}
 0x312   : > { %s1932_s20 = scalar_lea.hbm %s2437_s6, 2048  ;;  %s1936_s12 = scalar_lea.hbm %s2552_s3, 4096 }
 0x313   : > { %p1933_p10 = scmp.ne.s32.totalorder %s2437_s6, %s1932_s20  ;;  %p1937_p11 = scmp.lt.u32.totalorder %s2437_s6, %s2552_s3 }
 0x314   : > { %p1938_p0 = scmp.lt.u32.totalorder %s1936_s12, %s1932_s20  ;;  %p1940_p2 = scmp.lt.u32.totalorder %s1932_s20, %s2437_s6 }
 0x315   : > { %p1934_p13 = pnand %p1933_p10, %p2553_p5 }
 0x316   : > { %p1939_p1 = por %p1938_p0, %p1937_p11 }
 0x317   : > { %p1935_p6 = pneg %p1934_p13 }
 0x318   : > { %p1941_p4 = por %p1940_p2, %p1939_p1 }
 0x31a   : > { %p1942_p3 = pnand %p1941_p4, %p1935_p6 }
 0x31c   : > { %1945 = shalt.err (!%p1942_p3)
}
 0x31d   : > { %s2048_s21 = smov 128   ;;  %s2049_s22 = smov 8  }
 0x31e   : > { %1692 = dma.vmem_to_hbm [thread:$0]  (%p2553_p5), %s2440_s24, 2048, %s2437_s6, %s1280_s7, %s2048_s21, %s2048_s21, %s2049_s22  }
 0x31f PF: > { %s2554_s27 = sld [smem:[#allocation14_spill]]  ;;  %s2555_s19 = sld [smem:[#allocation21_spill]] }
 0x320   : > { %p1709_p9 = scmp.ge.s32.totalorder %s2036_s10, 2 }
 0x325   : > { %s1308_s16 = sand.u32 1, %s2554_s27   ;;  %p2556_p7 = scmp.ne.s32.totalorder %s2555_s19, 0 }
 0x326   : > { %s1309_s23 = scalar_lea.sflag [#allocation6], %s1308_s16 }
 0x327   : > { %p1702_p12 = pnand %p1709_p9, %p2556_p7 }
 0x329   : > { %1995 = dma.done.wait (!%p1702_p12), %s1309_s23, 2048  }
 0x32a   : > { %1997 = vsyncadd (!%p1702_p12), %s1309_s23, 4294965248  ;;  %s24_s10 = sadd.s32 1, %s2036_s10   ;;  %s2557_s14 = sld [smem:[#allocation18_spill]] }
 0x32b   : > { %p21_p8 = scmp.ge.s32.totalorder %s24_s10, 6   ;;  %s2558_s11 = sld [smem:[#allocation19_spill]] }
 0x32c   : > { %s2559_s17 = sld [smem:[#allocation16_spill]]  ;;  %s2560_s6 = sld [smem:[#allocation17_spill]] }
 0x32d   : > { %s2561_s24 = smov %s2004_s25  ;;  %s2562_s25 = smov %s2008_s26 }
 0x32e   : > { %s2564_s27 = smov %s2016_s28  ;;  %s2566_s29 = smov %s2028_s8 }
 0x32f   : > { %s2567_s30 = smov %s2032_s9  ;;  %23 = sbr.rel (!%p21_p8) target bundleno = 14 (0xe), region = 161 }
 0x330   : > { %s2563_s26 = smov %s2557_s14 }
 0x331   : > { %s2565_s28 = smov %s2558_s11 }
 0x332   : > { %s2568_s8 = smov %s2559_s17  ;;  %s2569_s9 = smov %s2560_s6 }
 0x336   :  { %1314 = vsyncpa [#allocation5], 1 }
 0x337   :  { %1316 = vsyncpa [#allocation5 + $0x1], 1 }
 0x338   :  { %1317 = vsyncpa [#allocation8], 1 }
 0x339   :  { %1318 = vsyncpa [#allocation6], 1 }
 0x33a   :  { %1320 = vsyncpa [#allocation6 + $0x1], 1 }

</bundles_post_ra>
